<compile_context>
chip_gen: v7x
topology: tpu7x:2x2x1
jax: 0.10.0
libtpu: 0.0.40
codegen_flags: <defaults>
</compile_context>

<pallas_src>
import jax
import jax.numpy as jnp
from jax.experimental import pallas as pl
from jax.experimental.pallas import tpu as pltpu


# ----------------------------------------------------------------------------
# Single-step cell: exact forward(x_t, h) semantics.
# ----------------------------------------------------------------------------
def rnn_cell_kernel(x_ref, h_ref, wih_ref, whh_ref, b_ref, out_ref):
    # x: [B, I] f32, h: [B, H] f32, W_ih: [I, H] bf16, W_hh: [H, H] bf16,
    # b (= b_i + b_h): [1, H] f32
    x = x_ref[...].astype(jnp.bfloat16)
    h = h_ref[...].astype(jnp.bfloat16)
    pre = (
        jnp.dot(x, wih_ref[...], preferred_element_type=jnp.float32)
        + jnp.dot(h, whh_ref[...], preferred_element_type=jnp.float32)
        + b_ref[...]
    )
    out_ref[...] = jnp.tanh(pre).astype(out_ref.dtype)


def rnn_cell(x_t, h, W_ih, W_hh, b_i, b_h):
    B, I = x_t.shape
    H = W_ih.shape[1]
    assert h.shape == (B, H) and W_hh.shape == (H, H)

    # Fold the two biases into one lane-axis operand (wrapper-side, tiny).
    b = (b_i + b_h).reshape(1, H).astype(jnp.float32)

    vmem = pl.BlockSpec(memory_space=pltpu.MemorySpace.VMEM)

    # No grid: kernel runs exactly once, no pipeline prologue / double buffers.
    return pl.pallas_call(
        rnn_cell_kernel,
        out_shape=jax.ShapeDtypeStruct((B, H), jnp.float32),
        in_specs=[vmem, vmem, vmem, vmem, vmem],
        out_specs=vmem,
    )(
        x_t.astype(jnp.float32),
        h.astype(jnp.float32),
        W_ih.astype(jnp.bfloat16),
        W_hh.astype(jnp.bfloat16),
        b,
    )


# ----------------------------------------------------------------------------
# Full-sequence driver: forward() applied T times, recurrence fused in-kernel,
# CHUNK timesteps per grid step.
# ----------------------------------------------------------------------------
def rnn_seq_kernel(x_ref, h0_ref, wih_ref, whh_ref, b_ref, hs_ref, h_carry):
    # x_ref   : [CHUNK, B, I] f32   streamed per grid step
    # h0_ref  : [B, H] f32          resident (constant index map)
    # wih_ref : [I, H] bf16         resident
    # whh_ref : [H, H] bf16         resident
    # b_ref   : [1, H] f32          resident (= b_i + b_h)
    # hs_ref  : [CHUNK, B, H] f32   output block for this chunk
    # h_carry : [B, H] f32 scratch  hidden state carried across chunks
    c = pl.program_id(0)

    @pl.when(c == 0)
    def _():
        h_carry[...] = h0_ref[...].astype(jnp.float32)

    C, B, I = x_ref.shape

    # Chunk input projection as ONE MXU matmul (M = CHUNK*B rows) + bias.
    # Reshape merges major dims only (B is a sublane multiple) -> layout free.
    x2d = x_ref[...].reshape(C * B, I).astype(jnp.bfloat16)
    xwb = jnp.dot(x2d, wih_ref[...], preferred_element_type=jnp.float32) + b_ref[...]

    # Serial recurrence over the chunk; h lives in vregs (1 vreg at B=8,H=128),
    # fully unrolled (CHUNK is a trace-time constant).
    h = h_carry[...]
    for t in range(C):
        rec = jnp.dot(
            h.astype(jnp.bfloat16), whh_ref[...],
            preferred_element_type=jnp.float32,
        )
        h = jnp.tanh(xwb[t * B:(t + 1) * B, :] + rec)
        hs_ref[t] = h.astype(hs_ref.dtype)

    # Spill to scratch only at the chunk boundary.
    h_carry[...] = h


def rnn_sequence(x_seq, h0, W_ih, W_hh, b_i, b_h, *, chunk=8):
    """Applies forward() over x_seq[t] for t = 0..T-1; returns all h_t."""
    T, B, I = x_seq.shape
    H = W_hh.shape[0]
    assert h0.shape == (B, H) and W_ih.shape == (I, H)
    chunk = min(chunk, T)
    assert T % chunk == 0, "demo driver requires T % chunk == 0"
    n_chunks = T // chunk

    b = (b_i + b_h).reshape(1, H).astype(jnp.float32)

    return pl.pallas_call(
        rnn_seq_kernel,
        out_shape=jax.ShapeDtypeStruct((T, B, H), jnp.float32),
        grid=(n_chunks,),
        in_specs=[
            # Streamed chunk of raw inputs.
            pl.BlockSpec((chunk, B, I), lambda c: (c, 0, 0)),
            # Constant index maps -> fetched once, VMEM-resident.
            pl.BlockSpec((B, H), lambda c: (0, 0)),
            pl.BlockSpec((I, H), lambda c: (0, 0)),
            pl.BlockSpec((H, H), lambda c: (0, 0)),
            pl.BlockSpec((1, H), lambda c: (0, 0)),
        ],
        out_specs=pl.BlockSpec((chunk, B, H), lambda c: (c, 0, 0)),
        scratch_shapes=[pltpu.VMEM((B, H), jnp.float32)],
        compiler_params=pltpu.CompilerParams(
            dimension_semantics=("arbitrary",)  # recurrence is serial in T
        ),
    )(
        x_seq.astype(jnp.float32),
        h0.astype(jnp.float32),
        W_ih.astype(jnp.bfloat16),
        W_hh.astype(jnp.bfloat16),
        b,
    )


if __name__ == "__main__":
    key = jax.random.PRNGKey(0)
    k_x, k_h, k_wih, k_whh, k_bi, k_bh, k_seq = jax.random.split(key, 7)

    batch = 8
    input_size = 64
    hidden_size = 128   # multiple of 128 -> lane-dense stores
    seq_len = 16
    chunk = 8           # 2 grid steps -> exercises the cross-chunk h carry

    # Fan-in-scaled demo weights: contractive recurrence so kernel/reference
    # precision differences (bf16 MXU vs f32) stay bounded across timesteps.
    W_ih = jax.random.normal(k_wih, (input_size, hidden_size), jnp.float32) / (
        float(input_size) ** 0.5
    )
    W_hh = jax.random.normal(k_whh, (hidden_size, hidden_size), jnp.float32) * (
        0.3 / float(hidden_size) ** 0.5
    )
    b_i = 0.1 * jax.random.normal(k_bi, (hidden_size,), jnp.float32)
    b_h = 0.1 * jax.random.normal(k_bh, (hidden_size,), jnp.float32)

    x_t = jax.random.normal(k_x, (batch, input_size), jnp.float32)
    h0 = jax.random.normal(k_h, (batch, hidden_size), jnp.float32)

    # --- 1) single-step cell: exact forward() semantics -----------------------
    out = jax.block_until_ready(rnn_cell(x_t, h0, W_ih, W_hh, b_i, b_h))
    ref = jnp.tanh(x_t @ W_ih + b_i + h0 @ W_hh + b_h)
    assert out.shape == (batch, hidden_size)
    cell_err = float(jnp.max(jnp.abs(out - ref)))
    assert cell_err < 3e-2, cell_err

    # --- 2) recurrence over a sequence, fused inside one pallas_call ----------
    x_seq = jax.random.normal(k_seq, (seq_len, batch, input_size), jnp.float32)
    hs = jax.block_until_ready(
        rnn_sequence(x_seq, h0, W_ih, W_hh, b_i, b_h, chunk=chunk)
    )

    def ref_step(h, x):
        h_new = jnp.tanh(x @ W_ih + b_i + h @ W_hh + b_h)
        return h_new, h_new

    _, hs_ref = jax.lax.scan(ref_step, h0, x_seq)
    assert hs.shape == (seq_len, batch, hidden_size)
    seq_err = float(jnp.max(jnp.abs(hs - hs_ref)))
    assert seq_err < 5e-2, seq_err

    print("KERNEL_OK")
</pallas_src>

<mosaic_0001>
module attributes {stable_mosaic.version = 11 : i64} {
  func.func @rnn_cell_kernel(%arg0: memref<8x64xf32, #tpu.memory_space<vmem>>, %arg1: memref<8x128xf32, #tpu.memory_space<vmem>>, %arg2: memref<64x128xbf16, #tpu.memory_space<vmem>>, %arg3: memref<128x128xbf16, #tpu.memory_space<vmem>>, %arg4: memref<1x128xf32, #tpu.memory_space<vmem>>, %arg5: memref<8x128xf32, #tpu.memory_space<vmem>>) attributes {dimension_semantics = [], scalar_prefetch = 0 : i64, scratch_operands = 0 : i64, tpu.core_type = #tpu.core_type<tc>} {
    %c0 = arith.constant 0 : index
    %c0_0 = arith.constant 0 : index
    %0 = vector.load %arg0[%c0, %c0_0] : memref<8x64xf32, #tpu.memory_space<vmem>>, vector<8x64xf32>
    %1 = arith.truncf %0 : vector<8x64xf32> to vector<8x64xbf16>
    %c0_1 = arith.constant 0 : index
    %c0_2 = arith.constant 0 : index
    %2 = vector.load %arg1[%c0_1, %c0_2] : memref<8x128xf32, #tpu.memory_space<vmem>>, vector<8x128xf32>
    %3 = arith.truncf %2 : vector<8x128xf32> to vector<8x128xbf16>
    %c0_3 = arith.constant 0 : index
    %c0_4 = arith.constant 0 : index
    %4 = vector.load %arg2[%c0_3, %c0_4] : memref<64x128xbf16, #tpu.memory_space<vmem>>, vector<64x128xbf16>
    %cst = arith.constant dense<0.000000e+00> : vector<8x128xf32>
    %5 = tpu.matmul %1, %4, %cst {dimension_numbers = #tpu.dot_dimension_numbers<[1], [0], [0], [1], [0, 0, 1, 1], [], []>} : vector<8x64xbf16>, vector<64x128xbf16>, vector<8x128xf32> -> vector<8x128xf32>
    %c0_5 = arith.constant 0 : index
    %c0_6 = arith.constant 0 : index
    %6 = vector.load %arg3[%c0_5, %c0_6] : memref<128x128xbf16, #tpu.memory_space<vmem>>, vector<128x128xbf16>
    %cst_7 = arith.constant dense<0.000000e+00> : vector<8x128xf32>
    %7 = tpu.matmul %3, %6, %cst_7 {dimension_numbers = #tpu.dot_dimension_numbers<[1], [0], [0], [1], [0, 0, 1, 1], [], []>} : vector<8x128xbf16>, vector<128x128xbf16>, vector<8x128xf32> -> vector<8x128xf32>
    %8 = arith.addf %5, %7 : vector<8x128xf32>
    %c0_8 = arith.constant 0 : index
    %c0_9 = arith.constant 0 : index
    %9 = vector.load %arg4[%c0_8, %c0_9] : memref<1x128xf32, #tpu.memory_space<vmem>>, vector<1x128xf32>
    %10 = vector.broadcast %9 : vector<1x128xf32> to vector<8x128xf32>
    %11 = arith.addf %8, %10 : vector<8x128xf32>
    %12 = math.tanh %11 : vector<8x128xf32>
    %c0_10 = arith.constant 0 : index
    %c0_11 = arith.constant 0 : index
    %13 = vector.load %arg5[%c0_10, %c0_11] : memref<8x128xf32, #tpu.memory_space<vmem>>, vector<8x128xf32>
    tpu.vector_store %arg5[%c0_10, %c0_11], %12 {strides = array<i32>} : memref<8x128xf32, #tpu.memory_space<vmem>>, vector<8x128xf32>,
    return
  }
}

</mosaic_0001>

<bundles_post_ra>
// kernel: tpu_custom_call.1
= control target key start
LH: loop header
LB: loop body
LE: loop exit
PB: predicated region body
PF: predicated region fallthrough
CT: control target
= control target key end

     0   :  { %10 = vsyncpa [#allocation3], 0  ;;  %s587_s0 = inlined_call_operand.hbm [shape: f32[8,64], index: 0, kind: input, shape index: {}]   ;;  %s588_s1 = inlined_call_operand.hbm [shape: f32[8,128], index: 1, kind: input, shape index: {}]   ;;  %s589_s2 = inlined_call_operand.hbm [shape: bf16[64,128], index: 2, kind: input, shape index: {}]   ;;  %s590_s3 = inlined_call_operand.hbm [shape: bf16[128,128], index: 3, kind: input, shape index: {}]   ;;  %s591_s4 = inlined_call_operand.vmem [shape: f32[1,128], index: 4, kind: input, shape index: {}]   ;;  %s592_s5 = inlined_call_operand.hbm [shape: f32[8,128], index: 5, kind: output, shape index: {}]  }
   0x1   :  { %11 = vsyncpa [#allocation6], 0 }
   0x2   :  { %12 = vsyncpa [#allocation9], 0 }
   0x3   :  { %13 = vsyncpa [#allocation4], 0  ;;  %s485_s18 = smov [#allocation5]   ;;  %s486_s20 = smov [#allocation2]  }
   0x4   :  { %s30_s19 = sshll.u32 %s485_s18, 4  ;;  %s20_s21 = sshll.u32 %s486_s20, 4  ;;  %s31_s19 = int_to_ptr.vmem [resolvable:$true] %s30_s19  ;;  %s21_s21 = int_to_ptr.vmem [resolvable:$true] %s20_s21 }
   0x5   :  { %s367_s24 = scalar_lea.hbm %s588_s1, 128 }
   0x6   :  { %p368_p0 = scmp.ne.s32.totalorder %s588_s1, %s367_s24  ;;  %p371_p1 = scmp.lt.u32.totalorder %s367_s24, %s588_s1 }
   0x8   :  { %p373_p2 = pnand %p371_p1, %p368_p0 }
   0xa   :  { %376 = shalt.err (!%p373_p2)
}
   0xb   :  { %s377_s29 = scalar_lea.vmem %s31_s19, 128  ;;  %p382_p4 = scmp.lt.s32.totalorder %s31_s19, %s31_s19 }
   0xc   :  { %p378_p3 = scmp.ne.s32.totalorder %s31_s19, %s377_s29  ;;  %p383_p5 = scmp.lt.s32.totalorder %s377_s29, %s377_s29 }
   0xe   :  { %p384_p6 = por %p383_p5, %p382_p4 }
  0x10   :  { %p385_p7 = pnand %p384_p6, %p378_p3 }
  0x12   :  { %388 = shalt.err (!%p385_p7)
}
  0x13   :  { %33 = dma.hbm_to_vmem [thread:$0]  %s588_s1, 128, %s31_s19, [#allocation6]  }
  0x14   :  { %s389_s9 = scalar_lea.hbm %s587_s0, 128 }
  0x15   :  { %p390_p8 = scmp.ne.s32.totalorder %s587_s0, %s389_s9  ;;  %p393_p9 = scmp.lt.u32.totalorder %s389_s9, %s587_s0 }
  0x17   :  { %p395_p10 = pnand %p393_p9, %p390_p8 }
  0x19   :  { %398 = shalt.err (!%p395_p10)
}
  0x1a   :  { %s399_s14 = scalar_lea.vmem %s21_s21, 128  ;;  %p404_p12 = scmp.lt.s32.totalorder %s21_s21, %s21_s21 }
  0x1b   :  { %p400_p11 = scmp.ne.s32.totalorder %s21_s21, %s399_s14  ;;  %p405_p13 = scmp.lt.s32.totalorder %s399_s14, %s399_s14 }
  0x1d   :  { %p406_p0 = por %p405_p13, %p404_p12 }
  0x1f   :  { %p407_p1 = pnand %p406_p0, %p400_p11 }
  0x21   :  { %410 = shalt.err (!%p407_p1)
}
  0x22   :  { %23 = dma.hbm_to_vmem [thread:$0]  %s587_s0, 128, %s21_s21, [#allocation3]  }
  0x23   :  { %s487_s16 = smov [#allocation7]   ;;  %s411_s20 = scalar_lea.hbm %s589_s2, 512 }
  0x24   :  { %s39_s17 = sshll.u32 %s487_s16, 4  ;;  %p412_p2 = scmp.ne.s32.totalorder %s589_s2, %s411_s20  ;;  %s40_s17 = int_to_ptr.vmem [resolvable:$true] %s39_s17 }
  0x25   :  { %p415_p3 = scmp.lt.u32.totalorder %s411_s20, %s589_s2 }
  0x27   :  { %p417_p4 = pnand %p415_p3, %p412_p2 }
  0x29   :  { %420 = shalt.err (!%p417_p4)
}
  0x2a   :  { %s421_s26 = scalar_lea.vmem %s40_s17, 512  ;;  %p426_p6 = scmp.lt.s32.totalorder %s40_s17, %s40_s17 }
  0x2b   :  { %p422_p5 = scmp.ne.s32.totalorder %s40_s17, %s421_s26  ;;  %p427_p7 = scmp.lt.s32.totalorder %s421_s26, %s421_s26 }
  0x2d   :  { %p428_p8 = por %p427_p7, %p426_p6 }
  0x2f   :  { %p429_p9 = pnand %p428_p8, %p422_p5 }
  0x31   :  { %432 = shalt.err (!%p429_p9)
}
  0x32   :  { %s488_s0 = smov 64   ;;  %s489_s21 = smov 4  }
  0x33   :  { %45 = dma.hbm_to_vmem [thread:$0]  %s589_s2, 512, %s40_s17, [#allocation6], %s488_s0, %s488_s0, %s489_s21  }
  0x34   :  { %s490_s29 = smov [#allocation8]   ;;  %s433_s8 = scalar_lea.hbm %s590_s3, 1024 }
  0x35   :  { %s51_s30 = sshll.u32 %s490_s29, 4  ;;  %p434_p10 = scmp.ne.s32.totalorder %s590_s3, %s433_s8  ;;  %s52_s30 = int_to_ptr.vmem [resolvable:$true] %s51_s30 }
  0x36   :  { %p437_p11 = scmp.lt.u32.totalorder %s433_s8, %s590_s3 }
  0x38   :  { %p439_p12 = pnand %p437_p11, %p434_p10 }
  0x3a   :  { %442 = shalt.err (!%p439_p12)
}
  0x3b   :  { %s443_s13 = scalar_lea.vmem %s52_s30, 1024  ;;  %p448_p0 = scmp.lt.s32.totalorder %s52_s30, %s52_s30 }
  0x3c   :  { %p444_p13 = scmp.ne.s32.totalorder %s52_s30, %s443_s13  ;;  %p449_p1 = scmp.lt.s32.totalorder %s443_s13, %s443_s13 }
  0x3e   :  { %p450_p2 = por %p449_p1, %p448_p0 }
  0x40   :  { %p451_p3 = pnand %p450_p2, %p444_p13 }
  0x42   :  { %454 = shalt.err (!%p451_p3)
}
  0x43   :  { %57 = dma.hbm_to_vmem [thread:$0]  %s590_s3, 1024, %s52_s30, [#allocation9], %s488_s0, %s488_s0, %s489_s21  }
  0x44   :  { %477 = dma.done.wait [#allocation3], 128  }
  0x45   :  { %478 = vsyncadd [#allocation3], 4294967168 }
  0x46   :  { %479 = dma.done.wait [#allocation6], 640  }
  0x47   :  { %480 = vsyncadd [#allocation6], 4294966656 }
  0x48   :  { %481 = dma.done.wait [#allocation9], 1024  }
  0x49   :  { %482 = vsyncadd [#allocation9], 4294966272  ;;  %v491_v0 = vmov 0.0   ;;  %vm492_vm0 = vmmov 0   ;;  %v353_v1 = vld [vmem:[#allocation8] sm:$0xff]   ;;  %v354_v2 = vld [vmem:[#allocation8 + $0x8] sm:$0xff]  }
  0x4a   :  { %312 = vmatprep.subr.bf16.mxu0 %v491_v0  ;;  %332 = vmatprep.subr.bf16.mxu1 %v491_v0  ;;  %v357_v3 = vld [vmem:[#allocation7] sm:$0xff]   ;;  %v355_v4 = vld [vmem:[#allocation8 + $0x10] sm:$0xff]   ;;  %v359_v5 = vld [vmem:[#allocation7 + $0x8] sm:$0xff]   ;;  %vm213_vm1 = vcmask 523264   ;;  %s493_s15 = smov [#allocation10]  }
  0x4b   :  { %340 = vmatprep.mubr.msk.bf16.mxu1 %vm492_vm0, %v491_v0  ;;  %328 = vmatprep.mubr.msk.bf16.mxu0 %vm492_vm0, %v491_v0  ;;  %v356_v6 = vld [vmem:[#allocation8 + $0x18] sm:$0xff]   ;;  %v361_v7 = vld [vmem:[#allocation7 + $0x10] sm:$0xff]   ;;  %v358_v8 = vld [vmem:[#allocation8 + $0x20] sm:$0xff]   ;;  %s273_s16 = sshll.u32 %s493_s15, 4  ;;  %s274_s16 = int_to_ptr.vmem [resolvable:$true] %s273_s16 }
  0x4c   :  { %313 = vmatpush3.bf16.msra.mxu0 %v353_v1  ;;  %333 = vmatpush3.bf16.msra.mxu1 %v357_v3  ;;  %v363_v9 = vld [vmem:[#allocation7 + $0x18] sm:$0xff]   ;;  %v73_v10 = vld [vmem:[#allocation2] sm:$0xff]  ;;  %v360_v12 = vld [vmem:[#allocation8 + $0x28] sm:$0xff]   ;;  %s455_s17 = scalar_lea.vmem %s274_s16, 128  ;;  %p460_p5 = scmp.lt.s32.totalorder %s274_s16, %s274_s16 }
  0x4d   :  { %314 = vmatprep.subr.bf16.mxu0 %v491_v0  ;;  %334 = vmatprep.subr.bf16.mxu1 %v491_v0  ;;  %v74_v11 = vpack.c.bf16 %v73_v10, %v73_v10  ;;  %v362_v13 = vld [vmem:[#allocation8 + $0x30] sm:$0xff]   ;;  %v364_v14 = vld [vmem:[#allocation8 + $0x38] sm:$0xff]   ;;  %p456_p4 = scmp.ne.s32.totalorder %s274_s16, %s455_s17  ;;  %p461_p6 = scmp.lt.s32.totalorder %s455_s17, %s455_s17 }
  0x4e   :  { %v75_v15 = vld [vmem:[#allocation5] sm:$0xff]  ;;  %v297_v22 = vld [vmem:[%s591_s4] ss:$0 sm:$0xff] }
  0x4f   :  { %v76_v16 = vpack.c.bf16 %v75_v15, %v75_v15  ;;  %p462_p7 = por %p461_p6, %p460_p5 }
  0x50   :  { %315 = vmatpush3.bf16.msra.mxu0 %v354_v2  ;;  %335 = vmatpush3.bf16.msra.mxu1 %v359_v5 }
  0x51   :  { %316 = vmatprep.subr.bf16.mxu0 %v491_v0  ;;  %336 = vmatprep.subr.bf16.mxu1 %v491_v0  ;;  %p463_p8 = pnand %p462_p7, %p456_p4 }
  0x54   :  { %317 = vmatpush3.bf16.msra.mxu0 %v355_v4  ;;  %337 = vmatpush3.bf16.msra.mxu1 %v361_v7 }
  0x55   :  { %318 = vmatprep.subr.bf16.mxu0 %v491_v0  ;;  %338 = vmatprep.subr.bf16.mxu1 %v491_v0 }
  0x58   :  { %319 = vmatpush3.bf16.msra.mxu0 %v356_v6  ;;  %339 = vmatpush3.bf16.msra.mxu1 %v363_v9 }
  0x59   :  { %320 = vmatprep.subr.bf16.mxu0 %v491_v0 }
  0x5b   :  { %341 = vmatmul.mubr.msk.bf16.vlgmr.msra.gmra.mrb[0].mxu1 %vm213_vm1, %v74_v11 }
  0x5c   :  { %321 = vmatpush3.bf16.msra.mxu0 %v358_v8 }
  0x5d   :  { %322 = vmatprep.subr.bf16.mxu0 %v491_v0 }
  0x60   :  { %323 = vmatpush3.bf16.msra.mxu0 %v360_v12 }
  0x61   :  { %324 = vmatprep.subr.bf16.mxu0 %v491_v0 }
  0x64   :  { %325 = vmatpush3.bf16.msra.mxu0 %v362_v13 }
  0x65   :  { %326 = vmatprep.subr.bf16.mxu0 %v491_v0 }
  0x68   :  { %327 = vmatpush3.bf16.msra.mxu0 %v364_v14 }
  0x6b   :  { %329 = vmatmul.mubr.bf16.vlgmr.msra.gmra.mrb[0].mxu0 %v76_v16 }
 0x12e   :  { %v251_v17 = vpop.f32.mrb[0].mxu1 }
 0x12f   :  { %v342_v18 = vpop.f32.mrb[1].mxu1 }
 0x130   :  { %v254_v19 = vpop.f32.mrb[2].mxu1 }
 0x131   :  { %v343_v20 = vpop.f32.mrb[3].mxu1 }
 0x13e   :  { %v183_v21 = vpop.f32.mrb[0].mxu0 }
 0x13f   :  { %v252_v23 = vadd.f32 %v251_v17, %v183_v21  ;;  %v330_v24 = vpop.f32.mrb[1].mxu0 }
 0x140   :  { %v186_v25 = vpop.f32.mrb[2].mxu0 }
 0x141   :  { %v264_v26 = vadd.f32 %v297_v22, %v252_v23  ;;  %v331_v27 = vpop.f32.mrb[3].mxu0 }
 0x143   :  { %365 = vtanh.f32 %v264_v26 }
 0x14d   :  { %v366_v28 = vpop.eup %365 }
 0x14e   :  { %266 = vst [vmem:[#allocation10] sm:$0xff] %v366_v28 }
 0x14f   :  { %466 = shalt.err (!%p463_p8)
}
 0x150   :  { %s467_s19 = scalar_lea.hbm %s592_s5, 128 }
 0x151   :  { %p468_p9 = scmp.ne.s32.totalorder %s592_s5, %s467_s19  ;;  %p471_p10 = scmp.lt.u32.totalorder %s467_s19, %s592_s5 }
 0x153   :  { %p473_p11 = pnand %p471_p10, %p468_p9 }
 0x155   :  { %476 = shalt.err (!%p473_p11)
}
 0x156   :  { %276 = dma.vmem_to_hbm [thread:$0]  %s274_s16, 128, %s592_s5, [#allocation4]  }
 0x157   :  { %483 = dma.done.wait [#allocation4], 128  }
 0x158   :  { %484 = vsyncadd [#allocation4], 4294967168 }
 0x159   :  { %280 = vsyncpa [#allocation3], 1 }
 0x15a   :  { %281 = vsyncpa [#allocation6], 1 }
 0x15b   :  { %282 = vsyncpa [#allocation9], 1 }
 0x15c   :  { %283 = vsyncpa [#allocation4], 1 }

</bundles_post_ra>
